<compile_context>
chip_gen: v5e
topology: v5e:2x2
jax: 0.10.0
libtpu: 0.0.40
codegen_flags: <defaults>
</compile_context>

<pallas_src>
import numpy as np
import jax
import jax.numpy as jnp
from jax.experimental import pallas as pl
from jax.experimental.pallas import tpu as pltpu


def similarities_kernel(fix_ref, ky_ref, kwbd_ref, sal_ref, seg_ref, segt_ref,
                        out_ref):
    """One grid step = BT batch items, concatenated along the lane (width) axis.

    fix_ref  : (1, H, BT*W)   fixation maps of BT items (matmul dtype)
    ky_ref   : (H, H)         gaussian band matrix along height
    kwbd_ref : (BT*W, BT*W)   block-diagonal gaussian band matrix along width
    sal_ref  : (H, BT*W)      normalized saliency map tiled BT times (f32)
    seg_ref  : (BT*W, BT)     lane -> item segment-sum matrix (f32)
    segt_ref : (BT, BT*W)     item -> lane broadcast matrix (f32)
    out_ref  : (1, 1, BT*W)   per-lane column-sum of minima (reduced per item
                              in the wrapper)
    """
    f = fix_ref[0]                                                    # (H, BT*W)

    # Separable gaussian blur (constant zero padding) == two MXU matmuls,
    # batched over BT items via the lane-concatenated layout + block-diag Kw.
    # First dot emits directly in the width-matmul operand dtype (no extra
    # f32->bf16 VPU pack pass on the fast path).
    tmp = jnp.dot(ky_ref[...], f,
                  preferred_element_type=kwbd_ref.dtype)              # (H, BT*W)
    blurred = jnp.dot(tmp, kwbd_ref[...],
                      preferred_element_type=jnp.float32)             # (H, BT*W)

    # Per-item spatial sums: column-sum then segment-matrix reduce.
    col_sums = jnp.sum(blurred, axis=0, keepdims=True)                # (1, BT*W)
    item_sums = jnp.dot(col_sums, seg_ref[...],
                        preferred_element_type=jnp.float32)           # (1, BT)

    # Exact per-item reciprocal (only BT values -> effectively free), guarded
    # so empty/padded items produce 0 rather than NaN/inf poisoning the lanes.
    safe = jnp.where(item_sums > 0, item_sums, jnp.float32(1.0))
    inv_item = jnp.where(item_sums > 0, 1.0 / safe, jnp.float32(0.0)) # (1, BT)
    inv_lane = jnp.dot(inv_item, segt_ref[...],
                       preferred_element_type=jnp.float32)            # (1, BT*W)

    emp = blurred * inv_lane                                          # (H, BT*W)

    # SIM metric: elementwise minima against the (hoisted) normalized saliency
    # map, column-sum only; the per-item reduce over W lanes is done outside.
    mins = jnp.minimum(emp, sal_ref[...])                             # (H, BT*W)
    out_ref[...] = jnp.sum(mins, axis=0, keepdims=True).reshape(1, 1, -1)


def _gaussian_band_matrix(n, sigma, truncate):
    """Dense (n, n) matrix M with M[i, j] = g[j - i + radius] (zero outside the
    band), reproducing 1D gaussian filtering with constant zero padding."""
    radius = int(truncate * sigma + 0.5)
    x = np.arange(-radius, radius + 1, dtype=np.float64)
    g = np.exp(-0.5 * (x / sigma) ** 2)
    g = g / g.sum()
    idx = np.arange(n)
    d = idx[None, :] - idx[:, None] + radius
    valid = (d >= 0) & (d <= 2 * radius)
    return np.where(valid, g[np.clip(d, 0, 2 * radius)], 0.0)


def build_fixation_maps(ns, ys, xs, batch_size, height, width, dtype=jnp.float32):
    # sparse_coo_tensor(...).to_dense() sums duplicate indices -> scatter-add of ones.
    return jnp.zeros((batch_size, height, width), dtype=dtype).at[ns, ys, xs].add(
        jnp.asarray(1.0, dtype))


def build_fixation_maps_wide(ns, ys, xs, nblk, block_batch, height, width,
                             dtype=jnp.float32):
    """Scatter-add fixations directly into the wide (nblk, H, BT*W) layout:
    block = n // BT, lane column = (n % BT) * W + x.  Pad slots stay zero."""
    g = ns // block_batch
    col = (ns % block_batch) * width + xs
    fix = jnp.zeros((nblk, height, block_batch * width), jnp.float32)
    fix = fix.at[g, ys, col].add(1.0)
    # NOTE: bf16 represents duplicate-fixation counts exactly only up to 256.
    return fix.astype(dtype)


def _pick_block_batch(batch_size, width, lane_target=256):
    """Target ~lane_target lanes per slab, but keep the grid >= 2 long when the
    batch allows it (v7x megacore sharding of the 'parallel' axis)."""
    bt = max(1, min(batch_size, max(1, lane_target // width)))
    while bt > 1 and -(-batch_size // bt) < 2:
        bt //= 2
    return bt


def similarities_forward(saliency_map, ns, ys, xs, batch_size, kernel_size,
                         truncate_gaussian=3, block_batch=None,
                         matmul_dtype=jnp.bfloat16):
    H, W = saliency_map.shape

    if block_batch is None:
        block_batch = _pick_block_batch(batch_size, W)
    BT = block_batch
    nblk = -(-batch_size // BT)
    b_pad = nblk * BT
    lanes = BT * W

    # ---- glue (plain JAX / numpy, outside the kernel) -----------------------
    fix_wide = build_fixation_maps_wide(ns, ys, xs, nblk, BT, H, W,
                                        dtype=matmul_dtype)           # (nblk, H, BT*W)

    ky_np = _gaussian_band_matrix(H, kernel_size, truncate_gaussian)
    kw_np = _gaussian_band_matrix(W, kernel_size, truncate_gaussian)
    ky = jnp.asarray(ky_np, dtype=matmul_dtype)                        # (H, H)
    kw_bd = jnp.asarray(np.kron(np.eye(BT), kw_np), dtype=matmul_dtype)  # (BT*W, BT*W)

    # Hoisted saliency normalization (done once, not per batch item).
    sal = saliency_map.astype(jnp.float32)
    sal_tiled = jnp.tile(sal / jnp.sum(sal), (1, BT))                  # (H, BT*W)

    seg_np = np.kron(np.eye(BT), np.ones((W, 1)))                      # (BT*W, BT)
    seg = jnp.asarray(seg_np, jnp.float32)
    seg_t = jnp.asarray(seg_np.T, jnp.float32)                         # (BT, BT*W)

    # ---- VMEM budget (explicit, ~50% headroom, capped at v7x physical) ------
    isz = jnp.dtype(matmul_dtype).itemsize
    est = (H * lanes * isz * 2                      # fixation block (double-buffered)
           + (H * H + lanes * lanes) * isz          # Ky + block-diag Kw (Buffered(1))
           + (H * lanes + 2 * lanes * BT) * 4       # sal + seg + seg_t (Buffered(1))
           + lanes * 4 * 2                          # output block (double-buffered)
           + 6 * H * lanes * 4)                     # f32 intermediates + slack
    vmem_limit = int(min(max(est * 3 // 2, 8 << 20), 64 << 20))

    const_kw = dict(pipeline_mode=pl.Buffered(1))   # single-buffer invariants

    # ---- Pallas kernel ------------------------------------------------------
    out = pl.pallas_call(
        similarities_kernel,
        out_shape=jax.ShapeDtypeStruct((nblk, 1, lanes), jnp.float32),
        grid=(nblk,),
        in_specs=[
            pl.BlockSpec((1, H, lanes), lambda g: (g, 0, 0)),              # BT fixation maps
            pl.BlockSpec((H, H), lambda g: (0, 0), **const_kw),            # Ky (constant)
            pl.BlockSpec((lanes, lanes), lambda g: (0, 0), **const_kw),    # block-diag Kw
            pl.BlockSpec((H, lanes), lambda g: (0, 0), **const_kw),        # tiled normalized sal
            pl.BlockSpec((lanes, BT), lambda g: (0, 0), **const_kw),       # segment-sum matrix
            pl.BlockSpec((BT, lanes), lambda g: (0, 0), **const_kw),       # segment-broadcast
        ],
        out_specs=pl.BlockSpec((1, 1, lanes), lambda g: (g, 0, 0)),        # lane-dense store
        compiler_params=pltpu.CompilerParams(
            dimension_semantics=("parallel",),       # megacore-friendly (nblk >= 2)
            vmem_limit_bytes=vmem_limit),
    )(fix_wide, ky, kw_bd, sal_tiled, seg, seg_t)

    # Hoisted final per-item reduce (tiny) + strip batch padding.
    sims = out.reshape(nblk, BT, W).sum(axis=-1).reshape(b_pad)
    return sims[:batch_size]


def similarities_reference(saliency_map, ns, ys, xs, batch_size,
                           kernel_size, truncate_gaussian=3):
    """Pure-JAX f32 reference mirroring the PyTorch semantics."""
    H, W = saliency_map.shape
    fix = build_fixation_maps(ns, ys, xs, batch_size, H, W, dtype=jnp.float32)
    ky = jnp.asarray(_gaussian_band_matrix(H, kernel_size, truncate_gaussian),
                     jnp.float32)
    kw = jnp.asarray(_gaussian_band_matrix(W, kernel_size, truncate_gaussian),
                     jnp.float32)
    blurred = jnp.einsum('hi,bij,jw->bhw', ky, fix, kw)
    emp = blurred / jnp.sum(blurred, axis=(1, 2), keepdims=True)
    sal = saliency_map.astype(jnp.float32)
    sal_norm = sal / jnp.sum(sal)
    return jnp.sum(jnp.minimum(emp, sal_norm[None, :, :]), axis=(1, 2))


if __name__ == "__main__":
    # Small deterministic problem: B=4 batch items, 32x32 saliency map,
    # 64 fixations, gaussian sigma=2.0, truncate=3.
    B, H, W, N_FIX = 4, 32, 32, 64
    KERNEL_SIZE = 2.0
    TRUNCATE = 3

    key = jax.random.PRNGKey(0)
    k_sal, k_n, k_y, k_x = jax.random.split(key, 4)

    saliency_map = jax.random.uniform(k_sal, (H, W), dtype=jnp.float32) + 0.1

    ns = jax.random.randint(k_n, (N_FIX,), 0, B, dtype=jnp.int32)
    # Guarantee every batch item has at least one fixation (metric undefined
    # otherwise, matching the original torch behavior's NaN).
    ns = ns.at[:B].set(jnp.arange(B, dtype=jnp.int32))
    ys = jax.random.randint(k_y, (N_FIX,), 0, H, dtype=jnp.int32)
    xs = jax.random.randint(k_x, (N_FIX,), 0, W, dtype=jnp.int32)

    ref = jax.block_until_ready(
        similarities_reference(saliency_map, ns, ys, xs, B, KERNEL_SIZE, TRUNCATE))

    # Exact path (f32 matmul operands): tight tolerance.
    sims_f32 = jax.block_until_ready(
        similarities_forward(saliency_map, ns, ys, xs, B, KERNEL_SIZE, TRUNCATE,
                             matmul_dtype=jnp.float32))
    np.testing.assert_allclose(np.asarray(sims_f32), np.asarray(ref),
                               rtol=1e-5, atol=1e-5)

    # Fast path (bf16 matmul operands, f32 accumulate, exact per-item recip):
    # looser tolerance covers only the bf16 operand rounding.
    sims_bf16 = jax.block_until_ready(
        similarities_forward(saliency_map, ns, ys, xs, B, KERNEL_SIZE, TRUNCATE,
                             matmul_dtype=jnp.bfloat16))
    np.testing.assert_allclose(np.asarray(sims_bf16), np.asarray(ref),
                               rtol=2e-2, atol=1e-3)

    print("KERNEL_OK")
</pallas_src>

<mosaic_0001>
module attributes {stable_mosaic.version = 11 : i64} {
  func.func @similarities_kernel(%arg0: i32, %arg1: memref<1x32x64xf32, #tpu.memory_space<vmem>>, %arg2: memref<32x32xf32, #tpu.memory_space<vmem>>, %arg3: memref<64x64xf32, #tpu.memory_space<vmem>>, %arg4: memref<32x64xf32, #tpu.memory_space<vmem>>, %arg5: memref<64x2xf32, #tpu.memory_space<vmem>>, %arg6: memref<2x64xf32, #tpu.memory_space<vmem>>, %arg7: memref<1x1x64xf32, #tpu.memory_space<vmem>>) attributes {dimension_semantics = [#tpu.dimension_semantics<parallel>], iteration_bounds = array<i64: 2>, scalar_prefetch = 0 : i64, scratch_operands = 0 : i64, tpu.core_type = #tpu.core_type<tc>, window_params = [{transform_indices = @transform_0, window_bounds = array<i64: 1, 32, 64>}, {pipeline_mode = #tpu.pipeline_mode<synchronous>, transform_indices = @transform_1, window_bounds = array<i64: 32, 32>}, {pipeline_mode = #tpu.pipeline_mode<synchronous>, transform_indices = @transform_2, window_bounds = array<i64: 64, 64>}, {pipeline_mode = #tpu.pipeline_mode<synchronous>, transform_indices = @transform_3, window_bounds = array<i64: 32, 64>}, {pipeline_mode = #tpu.pipeline_mode<synchronous>, transform_indices = @transform_4, window_bounds = array<i64: 64, 2>}, {pipeline_mode = #tpu.pipeline_mode<synchronous>, transform_indices = @transform_5, window_bounds = array<i64: 2, 64>}, {transform_indices = @transform_6, window_bounds = array<i64: 1, 1, 64>}]} {
    %c0 = arith.constant 0 : index
    %c0_0 = arith.constant 0 : index
    %c0_1 = arith.constant 0 : index
    %0 = vector.load %arg1[%c0, %c0_0, %c0_1] : memref<1x32x64xf32, #tpu.memory_space<vmem>>, vector<1x32x64xf32>
    %1 = vector.shape_cast %0 : vector<1x32x64xf32> to vector<32x64xf32>
    %c0_2 = arith.constant 0 : index
    %c0_3 = arith.constant 0 : index
    %2 = vector.load %arg2[%c0_2, %c0_3] : memref<32x32xf32, #tpu.memory_space<vmem>>, vector<32x32xf32>
    %cst = arith.constant dense<0.000000e+00> : vector<32x64xf32>
    %3 = tpu.matmul %2, %1, %cst {dimension_numbers = #tpu.dot_dimension_numbers<[1], [0], [0], [1], [0, 0, 1, 1], [], []>} : vector<32x32xf32>, vector<32x64xf32>, vector<32x64xf32> -> vector<32x64xf32>
    %c0_4 = arith.constant 0 : index
    %c0_5 = arith.constant 0 : index
    %4 = vector.load %arg3[%c0_4, %c0_5] : memref<64x64xf32, #tpu.memory_space<vmem>>, vector<64x64xf32>
    %cst_6 = arith.constant dense<0.000000e+00> : vector<32x64xf32>
    %5 = tpu.matmul %3, %4, %cst_6 {dimension_numbers = #tpu.dot_dimension_numbers<[1], [0], [0], [1], [0, 0, 1, 1], [], []>} : vector<32x64xf32>, vector<64x64xf32>, vector<32x64xf32> -> vector<32x64xf32>
    %cst_7 = arith.constant dense<0.000000e+00> : vector<64xf32>
    %6 = vector.multi_reduction <add>, %5, %cst_7 [0] : vector<32x64xf32> to vector<64xf32>
    %7 = vector.shape_cast %6 : vector<64xf32> to vector<1x64xf32>
    %c0_8 = arith.constant 0 : index
    %c0_9 = arith.constant 0 : index
    %8 = vector.load %arg5[%c0_8, %c0_9] : memref<64x2xf32, #tpu.memory_space<vmem>>, vector<64x2xf32>
    %cst_10 = arith.constant dense<0.000000e+00> : vector<1x2xf32>
    %9 = tpu.matmul %7, %8, %cst_10 {dimension_numbers = #tpu.dot_dimension_numbers<[1], [0], [0], [1], [0, 0, 1, 1], [], []>} : vector<1x64xf32>, vector<64x2xf32>, vector<1x2xf32> -> vector<1x2xf32>
    %cst_11 = arith.constant 0.000000e+00 : f32
    %10 = vector.broadcast %cst_11 : f32 to vector<1x2xf32>
    %11 = arith.cmpf ogt, %9, %10 : vector<1x2xf32>
    %cst_12 = arith.constant 1.000000e+00 : f32
    %12 = vector.broadcast %cst_12 : f32 to vector<1x2xf32>
    %13 = arith.select %11, %9, %12 : vector<1x2xi1>, vector<1x2xf32>
    %cst_13 = arith.constant 0.000000e+00 : f32
    %14 = vector.broadcast %cst_13 : f32 to vector<1x2xf32>
    %15 = arith.cmpf ogt, %9, %14 : vector<1x2xf32>
    %cst_14 = arith.constant 1.000000e+00 : f32
    %16 = vector.broadcast %cst_14 : f32 to vector<1x2xf32>
    %17 = arith.divf %16, %13 : vector<1x2xf32>
    %cst_15 = arith.constant 0.000000e+00 : f32
    %18 = vector.broadcast %cst_15 : f32 to vector<1x2xf32>
    %19 = arith.select %15, %17, %18 : vector<1x2xi1>, vector<1x2xf32>
    %c0_16 = arith.constant 0 : index
    %c0_17 = arith.constant 0 : index
    %20 = vector.load %arg6[%c0_16, %c0_17] : memref<2x64xf32, #tpu.memory_space<vmem>>, vector<2x64xf32>
    %cst_18 = arith.constant dense<0.000000e+00> : vector<1x64xf32>
    %21 = tpu.matmul %19, %20, %cst_18 {dimension_numbers = #tpu.dot_dimension_numbers<[1], [0], [0], [1], [0, 0, 1, 1], [], []>} : vector<1x2xf32>, vector<2x64xf32>, vector<1x64xf32> -> vector<1x64xf32>
    %22 = vector.broadcast %21 : vector<1x64xf32> to vector<32x64xf32>
    %23 = arith.mulf %5, %22 : vector<32x64xf32>
    %c0_19 = arith.constant 0 : index
    %c0_20 = arith.constant 0 : index
    %24 = vector.load %arg4[%c0_19, %c0_20] : memref<32x64xf32, #tpu.memory_space<vmem>>, vector<32x64xf32>
    %25 = arith.minimumf %23, %24 : vector<32x64xf32>
    %cst_21 = arith.constant dense<0.000000e+00> : vector<64xf32>
    %26 = vector.multi_reduction <add>, %25, %cst_21 [0] : vector<32x64xf32> to vector<64xf32>
    %27 = vector.shape_cast %26 : vector<64xf32> to vector<1x64xf32>
    %28 = vector.shape_cast %27 : vector<1x64xf32> to vector<1x1x64xf32>
    %c0_22 = arith.constant 0 : index
    %c0_23 = arith.constant 0 : index
    %c0_24 = arith.constant 0 : index
    %29 = vector.load %arg7[%c0_22, %c0_23, %c0_24] : memref<1x1x64xf32, #tpu.memory_space<vmem>>, vector<1x1x64xf32>
    tpu.vector_store %arg7[%c0_22, %c0_23, %c0_24], %28 {strides = array<i32>} : memref<1x1x64xf32, #tpu.memory_space<vmem>>, vector<1x1x64xf32>,
    return
  }
  func.func @transform_0(%arg0: i32) -> (i32, i32, i32) {
    %c0_i32 = arith.constant 0 : i32
    %c0_i32_0 = arith.constant 0 : i32
    %c0_i32_1 = arith.constant 0 : i32
    return %arg0, %c0_i32, %c0_i32_0 : i32, i32, i32
  }
  func.func @transform_1(%arg0: i32) -> (i32, i32) {
    %c0_i32 = arith.constant 0 : i32
    %c0_i32_0 = arith.constant 0 : i32
    %c0_i32_1 = arith.constant 0 : i32
    return %c0_i32, %c0_i32_0 : i32, i32
  }
  func.func @transform_2(%arg0: i32) -> (i32, i32) {
    %c0_i32 = arith.constant 0 : i32
    %c0_i32_0 = arith.constant 0 : i32
    %c0_i32_1 = arith.constant 0 : i32
    return %c0_i32, %c0_i32_0 : i32, i32
  }
  func.func @transform_3(%arg0: i32) -> (i32, i32) {
    %c0_i32 = arith.constant 0 : i32
    %c0_i32_0 = arith.constant 0 : i32
    %c0_i32_1 = arith.constant 0 : i32
    return %c0_i32, %c0_i32_0 : i32, i32
  }
  func.func @transform_4(%arg0: i32) -> (i32, i32) {
    %c0_i32 = arith.constant 0 : i32
    %c0_i32_0 = arith.constant 0 : i32
    %c0_i32_1 = arith.constant 0 : i32
    return %c0_i32, %c0_i32_0 : i32, i32
  }
  func.func @transform_5(%arg0: i32) -> (i32, i32) {
    %c0_i32 = arith.constant 0 : i32
    %c0_i32_0 = arith.constant 0 : i32
    %c0_i32_1 = arith.constant 0 : i32
    return %c0_i32, %c0_i32_0 : i32, i32
  }
  func.func @transform_6(%arg0: i32) -> (i32, i32, i32) {
    %c0_i32 = arith.constant 0 : i32
    %c0_i32_0 = arith.constant 0 : i32
    %c0_i32_1 = arith.constant 0 : i32
    return %arg0, %c0_i32, %c0_i32_0 : i32, i32, i32
  }
}

</mosaic_0001>

<bundles_post_ra>
// kernel: tpu_custom_call.1
= control target key start
LH: loop header
LB: loop body
LE: loop exit
PB: predicated region body
PF: predicated region fallthrough
CT: control target
= control target key end

     0   :  { %11 = vsyncpa [#allocation3], 0  ;;  %s1096_s0 = inlined_call_operand.vmem [shape: f32[2,32,64], index: 0, kind: input, shape index: {}]   ;;  %s1097_s1 = inlined_call_operand.hbm [shape: f32[32,32], index: 1, kind: input, shape index: {}]   ;;  %s1098_s2 = inlined_call_operand.hbm [shape: f32[64,64], index: 2, kind: input, shape index: {}]   ;;  %s1099_s3 = inlined_call_operand.hbm [shape: f32[32,64], index: 3, kind: input, shape index: {}]   ;;  %s1100_s4 = inlined_call_operand.vmem [shape: f32[64,2], index: 4, kind: input, shape index: {}]   ;;  %s1101_s5 = inlined_call_operand.vmem [shape: f32[2,64], index: 5, kind: input, shape index: {}]   ;;  %s1102_s6 = inlined_call_operand.hbm [shape: f32[2,1,64], index: 6, kind: output, shape index: {}]  }
   0x1   :  { %12 = vsyncpa [#allocation6], 0 }
   0x2   :  { %13 = vsyncpa [#allocation4], 0 }
   0x3   :  { %15 = vsyncpa [#allocation4 + $0x1], 0  ;;  %s927_s21 = smov 0   ;;  %s929_s22 = smov 0  }
   0x4   :  { %s931_s23 = smov 0   ;;  %s933_s24 = smov 0  }
   0x5 LB: > { %s948_s25 = sadd.s32 4294967295, %s885_s24   ;;  %s617_s26 = sadd.s32 4294967294, %s885_s24   ;;  %s885_s24 = sphi %s933_s24, %s1110_s24   ;;  %s881_s23 = sphi %s931_s23, %s1109_s23   ;;  %s877_s22 = sphi %s929_s22, %s1108_s22   ;;  %s873_s21 = sphi %s927_s21, %s1107_s21  }
   0x6   : > { %s952_s27 = sadd.s32 1, %s885_s24   ;;  %s159_s28 = sadd.s32 1, %s881_s23 }
   0x7   : > { %s156_s29 = ssub.s32 %s885_s24, %s952_s27  ;;  %p169_p0 = scmp.ne.s32.totalorder %s881_s23, %s877_s22 }
   0x8   : > { %p157_p1 = scmp.eq.s32.totalorder %s156_s29, 0  ;;  %p170_p2 = scmp.eq.s32.totalorder %s948_s25, 1 }
   0x9   : > { %p175_p3 = scmp.ne.s32.totalorder %s877_s22, %s873_s21  ;;  %p176_p4 = scmp.eq.s32.totalorder %s617_s26, 1 }
   0xa   : > { %s963_s30 = scalar_select %p157_p1, %s881_s23, %s159_s28  }
   0xb   : > { %p965_p5 = por %p170_p2, %p169_p0  ;;  %p969_p6 = por %p176_p4, %p175_p3 }
   0xc   : > { %p618_p7 = scmp.ge.s32.totalorder %s885_s24, 1  ;;  %p183_p8 = scmp.lt.s32.totalorder %s885_s24, 3 }
   0xd   : > { %p679_p9 = scmp.eq.s32.totalorder %s948_s25, 0  ;;  %s208_s12 = sshll.u32 %s1098_s2, 4  ;;  %s209_s12 = int_to_ptr.hbm [resolvable:$true] %s208_s12 }
   0xe   : > { %p976_p10 = pnand %p618_p7, %p183_p8  ;;  %s194_s15 = sshll.u32 %s1097_s1, 4  ;;  %s195_s15 = int_to_ptr.hbm [resolvable:$true] %s194_s15 }
   0xf   : > { %s887_s17 = smov [#allocation5]   ;;  %s888_s19 = smov 128  }
  0x10   : > { %p665_p11 = pneg %p976_p10  ;;  %s210_s18 = sshll.u32 %s887_s17, 4  ;;  %s211_s18 = int_to_ptr.vmem [resolvable:$true] %s210_s18 }
  0x11   : > { %s889_s20 = smov 8   ;;  %s890_s26 = smov [#allocation2]  }
  0x12   : > { %p990_p12 = pnand %p679_p9, %p665_p11  ;;  %s196_s28 = sshll.u32 %s890_s26, 4  ;;  %s197_s28 = int_to_ptr.vmem [resolvable:$true] %s196_s28 }
  0x13   : > { %s222_s11 = sshll.u32 %s1099_s3, 4  ;;  %s891_s13 = smov [#allocation7]   ;;  %s223_s11 = int_to_ptr.hbm [resolvable:$true] %s222_s11 }
  0x14   : > { %671 = dma.hbm_to_vmem [thread:$0]  (!%p990_p12), %s209_s12, 1024, %s211_s18, [#allocation6], %s888_s19, %s888_s19, %s889_s20  }
  0x15   : > { %668 = dma.hbm_to_vmem [thread:$0]  (!%p990_p12), %s195_s15, 512, %s197_s28, [#allocation3], %s888_s19, %s888_s19, %s889_s20  }
  0x16   : > { %s224_s14 = sshll.u32 %s891_s13, 4  ;;  %254 = sbr.rel (%p976_p10) target bundleno = 653 (0x28d), region = 44  ;;  %s225_s14 = int_to_ptr.vmem [resolvable:$true] %s224_s14 }
  0x17   : > { %674 = dma.hbm_to_vmem [thread:$0]  (!%p990_p12), %s223_s11, 512, %s225_s14, [#allocation6], %s888_s19, %s888_s19, %s889_s20  }
  0x1b   : > { %860 = dma.done.wait (%p679_p9), [#allocation3], 512  }
  0x1c   : > { %862 = vsyncadd (%p679_p9), [#allocation3], 4294966784 }
  0x1d   : > { %864 = dma.done.wait (%p679_p9), [#allocation6], 1536  }
  0x1e   : > { %866 = vsyncadd (%p679_p9), [#allocation6], 4294965760  ;;  %p294_p13 = scmp.lt.s32.totalorder %s948_s25, 1  ;;  %v356_v3 = vld [vmem:[#allocation5 + $0x38] sm:$0xff]  ;;  %v355_v4 = vld [vmem:[#allocation5 + $0x30] sm:$0xff]  ;;  %vm307_vm0 = vcmask 261120   ;;  %s527_s10 = scalar_lea.hbm %s1102_s6, %s948_s25 }
  0x1f   : > { %378 = vmatpush.msra.mxu1 %v356_v3  ;;  %v354_v6 = vld [vmem:[#allocation5 + $0x28] sm:$0xff]  ;;  %643 = vmatpush.msra.mxu3 %v356_v3  ;;  %v303_v7 = vld [vmem:[#allocation2] sm:$0xff]  ;;  %v352_v9 = vld [vmem:[#allocation5 + $0x18] sm:$0xff]  ;;  %vm357_vm1 = vcmask 523264   ;;  %vm466_vm2 = vcmask 1041408   ;;  %vm462_vm8 = vcmask 15360  }
  0x20   : > { %s295_s12 = scalar_select %p294_p13, %s948_s25, 1  ;;  %v353_v8 = vld [vmem:[#allocation5 + $0x20] sm:$0xff]  ;;  %v351_v10 = vld [vmem:[#allocation5 + $0x10] sm:$0xff]  ;;  %v350_v11 = vld [vmem:[#allocation5 + $0x8] sm:$0xff]  ;;  %vm516_vm9 = vcmask 516096  }
  0x21   : > { %379 = vmatpush.msra.mxu1 %v355_v4  ;;  %644 = vmatpush.msra.mxu3 %v355_v4  ;;  %v304_v12 = vld [vmem:[#allocation2 + $0x8] sm:$0xff]  ;;  %v305_v13 = vld [vmem:[#allocation2 + $0x10] sm:$0xff]  ;;  %v306_v14 = vld [vmem:[#allocation2 + $0x18] sm:$0xff]  ;;  %s292_s26 = sand.u32 1, %s877_s22   ;;  %s531_s14 = sshll.u32 %s527_s10, 4  ;;  %s532_s14 = int_to_ptr.hbm [resolvable:$true] %s531_s14 }
  0x22   : > { %s642_s15 = sshll.u32 %s295_s12, 5  ;;  %v349_v15 = vld [vmem:[#allocation5] sm:$0xff]  ;;  %v419_v20 = vld [vmem:[%s1100_s4 + $0x38] sm:$0xff]  ;;  %v418_v21 = vld [vmem:[%s1100_s4 + $0x30] sm:$0xff]  ;;  %s293_s11 = scalar_lea.vmem [#allocation8], %s292_s26 }
  0x23   : > { %s298_s17 = scalar_lea.vmem %s1096_s0, %s642_s15  ;;  %380 = vmatpush.msra.mxu1 %v354_v6  ;;  %645 = vmatpush.msra.mxu3 %v354_v6  ;;  %v417_v22 = vld [vmem:[%s1100_s4 + $0x28] sm:$0xff]  ;;  %v416_v24 = vld [vmem:[%s1100_s4 + $0x20] sm:$0xff]  ;;  %v415_v25 = vld [vmem:[%s1100_s4 + $0x18] sm:$0xff]  ;;  %s529_s13 = sshll.u32 %s293_s11, 4  ;;  %s530_s13 = int_to_ptr.vmem [resolvable:$true] %s529_s13 }
  0x24   : > { %v302_v0 = vld [vmem:[%s298_s17 + $0x18] sm:$0xff]  ;;  %v301_v1 = vld [vmem:[%s298_s17 + $0x10] sm:$0xff]  ;;  %v300_v2 = vld [vmem:[%s298_s17 + $0x8] sm:$0xff]  ;;  %431 = vmatpush.msra.mxu2 %v419_v20  ;;  %s519_s12 = scalar_lea.sflag [#allocation4], %s292_s26  ;;  %s829_s15 = sshra.s32 %s532_s14, 4  ;;  %s830_s15 = int_to_ptr.hbm [resolvable:$true] %s829_s15 }
  0x25   : > { %332 = vmatpush.msra.mxu0 %v302_v0  ;;  %v299_v5 = vld [vmem:[%s298_s17] sm:$0xff]  ;;  %381 = vmatpush.msra.mxu1 %v353_v8  ;;  %v414_v26 = vld [vmem:[%s1100_s4 + $0x10] sm:$0xff]  ;;  %v413_v27 = vld [vmem:[%s1100_s4 + $0x8] sm:$0xff]  ;;  %s831_s16 = scalar_lea.hbm %s830_s15, 1  ;;  %s835_s17 = scalar_lea.hbm %s1102_s6, 2 }
  0x26   : > { %646 = vmatpush.msra.mxu3 %v353_v8  ;;  %432 = vmatpush.msra.mxu2 %v418_v21  ;;  %v412_v28 = vld [vmem:[%s1100_s4] sm:$0xff]  ;;  %v496_v62 = vld [vmem:[#allocation7 + $0x8] sm:$0xff]  ;;  %v497_v63 = vld [vmem:[#allocation7 + $0x10] sm:$0xff]  ;;  %p832_p0 = scmp.ne.s32.totalorder %s830_s15, %s831_s16  ;;  %p836_p3 = scmp.lt.s32.totalorder %s830_s15, %s1102_s6 }
  0x27   : > { %333 = vmatpush.msra.mxu0 %v301_v1  ;;  %382 = vmatpush.msra.mxu1 %v352_v9  ;;  %v461_v45 = vld [vmem:[%s1101_s5] sm:$0x3]  ;;  %v498_v4 = vld [vmem:[#allocation7 + $0x18] sm:$0xff]  ;;  %p837_p4 = scmp.lt.s32.totalorder %s835_s17, %s831_s16 }
  0x28   : > { %647 = vmatpush.msra.mxu3 %v352_v9  ;;  %433 = vmatpush.msra.mxu2 %v417_v22  ;;  %v495_v61 = vld [vmem:[#allocation7] sm:$0xff]  ;;  %p833_p1 = pnand %p832_p0, %p965_p5 }
  0x29   : > { %334 = vmatpush.msra.mxu0 %v300_v2  ;;  %383 = vmatpush.msra.mxu1 %v351_v10  ;;  %p838_p7 = por %p837_p4, %p836_p3 }
  0x2a   : > { %648 = vmatpush.msra.mxu3 %v351_v10  ;;  %434 = vmatpush.msra.mxu2 %v416_v24  ;;  %p834_p2 = pneg %p833_p1 }
  0x2b   : > { %335 = vmatpush.msra.mxu0 %v299_v5  ;;  %384 = vmatpush.msra.mxu1 %v350_v11 }
  0x2c   : > { %629 = vmatmul.msk.f32.vlgmr.msra.gmra.mxu0 %vm307_vm0, %v303_v7  ;;  %649 = vmatpush.msra.mxu3 %v350_v11  ;;  %p839_p8 = pnand %p838_p7, %p834_p2 }
  0x2d   : > { %385 = vmatpush.msra.mxu1 %v349_v15  ;;  %435 = vmatpush.msra.mxu2 %v415_v25 }
  0x2e   : > { %650 = vmatpush.msra.mxu3 %v349_v15 }
  0x2f   : > { %436 = vmatpush.msra.mxu2 %v414_v26 }
  0x30   : > { %638 = vmatpush.msk.msrb.mxu3 %vm466_vm2, %v461_v45 }
  0x31   : > { %437 = vmatpush.msra.mxu2 %v413_v27 }
  0x33   : > { %438 = vmatpush.msra.mxu2 %v412_v28 }
  0x34   : > { %630 = vmatmul.msk.f32.gmra.mxu0 %vm307_vm0, %v304_v12 }
  0x3c   : > { %631 = vmatmul.msk.f32.gmra.mxu0 %vm307_vm0, %v305_v13 }
  0x44   : > { %632 = vmatmul.msk.f32.gmra.mxu0 %vm307_vm0, %v306_v14 }
  0xa9   : > { %v337_v16 = vpop.f32.mrf.mxu0 }
  0xaa   : > { %633 = vmatmul.msk.f32.vlgmr.msra.gmra.mxu1 %vm357_vm1, %v337_v16 }
  0xb1   : > { %v340_v17 = vpop.f32.mrf.mxu0 }
  0xb2   : > { %634 = vmatmul.msk.f32.gmra.mxu1 %vm357_vm1, %v340_v17 }
  0xb9   : > { %v343_v18 = vpop.f32.mrf.mxu0 }
  0xba   : > { %635 = vmatmul.msk.f32.gmra.mxu1 %vm357_vm1, %v343_v18 }
  0xc1   : > { %v346_v19 = vpop.f32.mrf.mxu0 }
  0xc2   : > { %636 = vmatmul.msk.f32.vlgmr.msra.gmra.mxu3 %vm357_vm1, %v346_v19 }
 0x127   : > { %v387_v23 = vpop.f32.mrf.mxu1 }
 0x128   : > { %v399_v32 = vsel %vm357_vm1, %v387_v23, 0.0 }
 0x12f   : > { %v390_v29 = vpop.f32.mrf.mxu1 }
 0x130   : > { %v400_v31 = vsel %vm357_vm1, %v390_v29, 0.0 }
 0x131   : > { %v401_v34 = vadd.f32 %v400_v31, %v399_v32 }
 0x137   : > { %v393_v30 = vpop.f32.mrf.mxu1 }
 0x138   : > { %v402_v33 = vsel %vm357_vm1, %v393_v30, 0.0 }
 0x139   : > { %v403_v35 = vadd.f32 %v402_v33, %v401_v34 }
 0x145   : > { %v396_v36 = vpop.f32.mrf.mxu3 }
 0x146   : > { %v404_v37 = vsel %vm357_vm1, %v396_v36, 0.0 }
 0x147   : > { %v405_v38 = vadd.f32 %v404_v37, %v403_v35 }
 0x149   : > { %v406_v39 = vrot.slane %v405_v38, 4 }
 0x14b   : > { %v407_v40 = vadd.f32 %v406_v39, %v405_v38 }
 0x14d   : > { %v408_v41 = vrot.slane %v407_v40, 2 }
 0x14f   : > { %v409_v42 = vadd.f32 %v408_v41, %v407_v40 }
 0x151   : > { %v410_v43 = vrot.slane %v409_v42, 1 }
 0x153   : > { %v411_v44 = vadd.f32 %v410_v43, %v409_v42 }
 0x155   : > { %637 = vmatmul.msk.f32.vlgmr.msra.gmra.mxu2 %vm357_vm1, %v411_v44 }
 0x1d8   : > { %v440_v46 = vpop.f32.mrf.mxu2 }
 0x1d9   : > { %vm443_vm3 = vcmp.gt.f32.partialorder %v440_v46, 0.0 }
 0x1da   : > { %v444_v47 = vsel %vm443_vm3, %v440_v46, 1.0 }
 0x1db   : > { %723 = vrcp.f32 %v444_v47  ;;  %v456_v51 = vand.u32 2147483648, %v444_v47  ;;  %v454_v53 = vand.u32 2147483647, %v444_v47  ;;  %vm450_vm5 = vweird.f32 %v444_v47 }
 0x1dd   : > { %v457_v55 = vor.u32 1.1754944e-38, %v456_v51  ;;  %vm455_vm7 = vcmp.eq.f32.partialorder %v454_v53, 8.507059e+37 }
 0x1e1   : > { %v724_v48 = vpop.eup %723 }
 0x1e2   : > { %v446_v49 = vmul.f32 %v724_v48, %v444_v47  ;;  %vm451_vm4 = vweird.f32 %v724_v48 }
 0x1e3   : > { %vm452_vm6 = vmor %vm450_vm5, %vm451_vm4 }
 0x1e4   : > { %v447_v50 = vsub.f32 1.0, %v446_v49 }
 0x1e6   : > { %v448_v52 = vmul.f32 %v724_v48, %v447_v50 }
 0x1e8   : > { %v449_v54 = vadd.f32 %v724_v48, %v448_v52 }
 0x1ea   : > { %v453_v56 = vsel %vm452_vm6, %v724_v48, %v449_v54 }
 0x1eb   : > { %v458_v57 = vsel %vm455_vm7, %v457_v55, %v453_v56 }
 0x1ec   : > { %v460_v58 = vsel %vm443_vm3, %v458_v57, 0.0 }
 0x1ed   : > { %639 = vmatmul.msk.f32.vlgmr.msrb.gmra.mxu3 %vm462_vm8, %v460_v58 }
 0x270   : > { %v487_v59 = vpop.f32.mrf.mxu3 }
 0x271   : > { %v490_v60 = vperm.slane %v487_v59, 0 }
 0x273   : > { %v491_v0 = vmul.f32 %v490_v60, %v387_v23  ;;  %v492_v1 = vmul.f32 %v490_v60, %v390_v29  ;;  %v493_v2 = vmul.f32 %v490_v60, %v393_v30  ;;  %v494_v3 = vmul.f32 %v490_v60, %v396_v36 }
 0x275   : > { %v499_v5 = vmin.f32 %v491_v0, %v495_v61  ;;  %v500_v6 = vmin.f32 %v492_v1, %v496_v62  ;;  %v501_v7 = vmin.f32 %v493_v2, %v497_v63  ;;  %v502_v8 = vmin.f32 %v494_v3, %v498_v4 }
 0x277   : > { %v503_v9 = vsel %vm357_vm1, %v499_v5, 0.0  ;;  %v504_v10 = vsel %vm357_vm1, %v500_v6, 0.0  ;;  %v506_v12 = vsel %vm357_vm1, %v501_v7, 0.0  ;;  %v508_v14 = vsel %vm357_vm1, %v502_v8, 0.0 }
 0x278   : > { %v505_v11 = vadd.f32 %v504_v10, %v503_v9 }
 0x27a   : > { %v507_v13 = vadd.f32 %v506_v12, %v505_v11 }
 0x27c   : > { %v509_v15 = vadd.f32 %v508_v14, %v507_v13 }
 0x27e   : > { %v510_v16 = vrot.slane %v509_v15, 4 }
 0x280   : > { %v511_v17 = vadd.f32 %v510_v16, %v509_v15 }
 0x282   : > { %v512_v18 = vrot.slane %v511_v17, 2 }
 0x284   : > { %v513_v19 = vadd.f32 %v512_v18, %v511_v17 }
 0x286   : > { %v514_v20 = vrot.slane %v513_v19, 1 }
 0x288   : > { %v515_v21 = vadd.f32 %v514_v20, %v513_v19 }
 0x28a   : > { %517 = vst.msk [vmem:[%s293_s11] sm:$0x1] %vm516_vm9, %v515_v21 }
 0x28b   : > { %842 = shalt.err (!%p839_p8)
}
 0x28c   : > { %663 = dma.vmem_to_hbm [thread:$0]  (%p965_p5), %s530_s13, 16, %s532_s14, %s519_s12  }
 0x28d PF: > { %p685_p9 = scmp.ge.s32.totalorder %s885_s24, 2  ;;  %s543_s20 = sand.u32 1, %s873_s21  }
 0x28e   : > { %s544_s26 = scalar_lea.sflag [#allocation4], %s543_s20 }
 0x28f   : > { %p676_p10 = pnand %p685_p9, %p969_p6 }
 0x291   : > { %p677_p11 = pneg %p676_p10 }
 0x293   : > { %868 = dma.done.wait (%p677_p11), %s544_s26, 16  }
 0x294   : > { %870 = vsyncadd (%p677_p11), %s544_s26, 4294967280  ;;  %p18_p12 = scmp.ge.s32.totalorder %s952_s27, 4   ;;  %s1107_s21 = smov %s877_s22 }
 0x295   : > { %s1108_s22 = smov %s881_s23  ;;  %s1109_s23 = smov %s963_s30 }
 0x296   : > { %s1110_s24 = smov %s952_s27  ;;  %20 = sbr.rel (!%p18_p12) target bundleno = 5 (0x5), region = 92 }
 0x29b   :  { %549 = vsyncpa [#allocation3], 1 }
 0x29c   :  { %551 = vsyncpa [#allocation3 + $0x1], 1 }
 0x29d   :  { %552 = vsyncpa [#allocation6], 1 }
 0x29e   :  { %553 = vsyncpa [#allocation4], 1 }
 0x29f   :  { %555 = vsyncpa [#allocation4 + $0x1], 1 }

</bundles_post_ra>
